<compile_context>
chip_gen: v7x
topology: tpu7x:2x2x1
jax: 0.10.0
libtpu: 0.0.40
codegen_flags: <defaults>
</compile_context>

<pallas_src>
import functools

import jax
import jax.numpy as jnp
from jax.experimental import pallas as pl
from jax.experimental.pallas import tpu as pltpu


def _pick_hw_tile(hw, cv_in, c_out, *, bytes_per_elem=4, budget_bytes=12 << 20):
    """Largest HW tile (multiple of 128, or the full HW) that keeps the
    double-buffered vis+out blocks under `budget_bytes`."""
    if hw <= 512:
        return hw  # full-dim block is always layout-legal
    per_hw = 2 * bytes_per_elem * (cv_in + c_out)  # 2x for double-buffering
    t = max(128, (budget_bytes // per_hw) // 128 * 128)
    t = min(t, 2048)
    if t >= hw:
        return hw
    return int(t)


def _mutan_kernel(vis_ref, lang_ref, wvt_ref, bv_ref, o_ref, *, reduce_sum: bool):
    # vis_ref : (1, Cv_in, THW)   current (batch, HW-tile) block, channels on sublanes
    # lang_ref: (1, Cout, 1)      [reduce_sum=False]  or (1, 1, Cout) [reduce_sum=True]
    #           -> precomputed tanh(lang @ Wl + bl) for this batch element
    # wvt_ref : (Cout, Cv_in)     transposed 1x1-conv weight
    # bv_ref  : (Cout, 1)         bias as a column (broadcasts over HW lanes)
    # o_ref   : (1, Cout, THW)    or (1, 1, THW) if reduce_sum
    vis = vis_ref[0]                                         # (Cv_in, THW)
    vis_t = jnp.tanh(
        jnp.dot(wvt_ref[...], vis, preferred_element_type=jnp.float32)
        + bv_ref[...]
    )                                                        # (Cout, THW) f32

    if reduce_sum:
        lang_row = lang_ref[0]                               # (1, Cout)
        # sum_c lang_t[c] * vis_t[c, hw]  ==  matvec -> (1, THW), lane-dense.
        o_ref[0] = jnp.dot(
            lang_row, vis_t, preferred_element_type=jnp.float32
        ).astype(o_ref.dtype)
    else:
        lang_col = lang_ref[0]                               # (Cout, 1)
        o_ref[0] = (vis_t * lang_col).astype(o_ref.dtype)    # (Cout, THW)


def mutan_head(vis_feat, lang_feat, params, *, reduce_sum=False):
    """vis_feat: (B, Cv_in, H, W) NCHW; lang_feat: (B, Cl_in, 1, 1) NCHW."""
    w_vis, b_vis, w_lang, b_lang = params
    B, Cv_in, H, W = vis_feat.shape
    Cl_in = lang_feat.shape[1]
    Cout = w_vis.shape[1]
    HW = H * W
    out_c = 1 if reduce_sum else Cout

    # Pure reshape (no transpose): NCHW -> (B, C, HW).
    vis = vis_feat.reshape(B, Cv_in, HW)

    # Language branch hoisted out of the kernel (tiny: one row per batch).
    lang_t = jnp.tanh(lang_feat.reshape(B, Cl_in) @ w_lang
                      + b_lang.reshape(1, Cout))             # (B, Cout)

    # Kernel-side orientation of the vis-conv parameters.
    wvt = jnp.transpose(w_vis)                               # (Cout, Cv_in)
    bv_col = b_vis.reshape(Cout, 1)                          # (Cout, 1)

    thw = _pick_hw_tile(HW, Cv_in, out_c)
    n_t = pl.cdiv(HW, thw)

    if reduce_sum:
        lang_arr = lang_t.reshape(B, 1, Cout)
        lang_spec = pl.BlockSpec((1, 1, Cout), lambda b, t: (b, 0, 0))
    else:
        lang_arr = lang_t.reshape(B, Cout, 1)
        lang_spec = pl.BlockSpec((1, Cout, 1), lambda b, t: (b, 0, 0))

    cost = pl.CostEstimate(
        flops=2 * B * HW * Cv_in * Cout
        + (2 * B * HW * Cout if reduce_sum else B * HW * Cout),
        transcendentals=B * HW * Cout,
        bytes_accessed=4 * (B * HW * Cv_in + B * HW * out_c
                            + Cout * Cv_in + Cout + B * Cout),
    )

    kernel = functools.partial(_mutan_kernel, reduce_sum=reduce_sum)

    out = pl.pallas_call(
        kernel,
        out_shape=jax.ShapeDtypeStruct((B, out_c, HW), vis_feat.dtype),
        grid_spec=pltpu.PrefetchScalarGridSpec(
            num_scalar_prefetch=0,
            grid=(B, n_t),
            in_specs=[
                pl.BlockSpec((1, Cv_in, thw), lambda b, t: (b, 0, t)),
                lang_spec,
                pl.BlockSpec((Cout, Cv_in), lambda b, t: (0, 0)),
                pl.BlockSpec((Cout, 1), lambda b, t: (0, 0)),
            ],
            out_specs=pl.BlockSpec((1, out_c, thw), lambda b, t: (b, 0, t)),
        ),
        compiler_params=pltpu.CompilerParams(
            dimension_semantics=("parallel", "parallel"),
            vmem_limit_bytes=32 * 1024 * 1024,
        ),
        cost_estimate=cost,
    )(vis, lang_arr, wvt, bv_col)

    # (B, out_c, HW) -> NCHW (pure reshape).
    return out.reshape(B, out_c, H, W)


def mutan_head_ref(vis_feat, lang_feat, params, *, reduce_sum=False):
    """Pure-JAX reference matching the PyTorch forward."""
    w_vis, b_vis, w_lang, b_lang = params
    vis_t = jnp.tanh(
        jnp.einsum("bchw,co->bohw", vis_feat, w_vis)
        + b_vis.reshape(1, -1, 1, 1))
    lang_t = jnp.tanh(
        jnp.einsum("bchw,co->bohw", lang_feat, w_lang)
        + b_lang.reshape(1, -1, 1, 1))
    out = vis_t * lang_t            # broadcasts (B,C,1,1) over spatial
    if reduce_sum:
        out = out.sum(axis=1, keepdims=True)
    return out


if __name__ == "__main__":
    # Small, deterministic shapes consistent with the module.
    B = 2
    vis_ori_size = 32          # input vis channels
    vis_reduced_size = 64      # conv out channels (== hid_size so multiply is valid)
    lang_size = 64             # input lang channels
    hid_size = 64
    H = W = 8

    key = jax.random.PRNGKey(0)
    k1, k2, k3, k4, k5, k6 = jax.random.split(key, 6)

    # Deterministic parameter init (Conv2d(k=1) weight stored as (C_in, C_out)).
    w_vis = (jax.random.normal(k1, (vis_ori_size, vis_reduced_size), jnp.float32)
             * (1.0 / jnp.sqrt(vis_ori_size)))
    b_vis = jax.random.normal(k2, (1, vis_reduced_size), jnp.float32) * 0.1
    w_lang = (jax.random.normal(k3, (lang_size, hid_size), jnp.float32)
              * (1.0 / jnp.sqrt(lang_size)))
    b_lang = jax.random.normal(k4, (1, hid_size), jnp.float32) * 0.1
    params = (w_vis, b_vis, w_lang, b_lang)

    # Inputs (NCHW).  lang_feat is a global feature (B, lang_size, 1, 1).
    vis_feat = jax.random.normal(k5, (B, vis_ori_size, H, W), jnp.float32)
    lang_feat = jax.random.normal(k6, (B, lang_size, 1, 1), jnp.float32)

    out = mutan_head(vis_feat, lang_feat, params, reduce_sum=False)
    out = jax.block_until_ready(out)
    ref = mutan_head_ref(vis_feat, lang_feat, params, reduce_sum=False)
    assert out.shape == (B, vis_reduced_size, H, W), out.shape
    assert jnp.allclose(out, ref, atol=1e-5, rtol=1e-5), "mismatch vs reference"

    # Also exercise the reduce_sum=True path.
    out_rs = jax.block_until_ready(
        mutan_head(vis_feat, lang_feat, params, reduce_sum=True))
    ref_rs = mutan_head_ref(vis_feat, lang_feat, params, reduce_sum=True)
    assert out_rs.shape == (B, 1, H, W), out_rs.shape
    assert jnp.allclose(out_rs, ref_rs, atol=1e-5, rtol=1e-5), "reduce_sum mismatch"

    print("KERNEL_OK")
</pallas_src>

<mosaic_0001>
module attributes {stable_mosaic.version = 11 : i64} {
  func.func @_mutan_kernel(%arg0: i32, %arg1: i32, %arg2: memref<1x32x64xf32, #tpu.memory_space<vmem>>, %arg3: memref<1x64x1xf32, #tpu.memory_space<vmem>>, %arg4: memref<64x32xf32, #tpu.memory_space<vmem>>, %arg5: memref<64x1xf32, #tpu.memory_space<vmem>>, %arg6: memref<1x64x64xf32, #tpu.memory_space<vmem>>) attributes {dimension_semantics = [#tpu.dimension_semantics<parallel>, #tpu.dimension_semantics<parallel>], iteration_bounds = array<i64: 2, 1>, scalar_prefetch = 0 : i64, scratch_operands = 0 : i64, tpu.core_type = #tpu.core_type<tc>, window_params = [{transform_indices = @transform_0, window_bounds = array<i64: 1, 32, 64>}, {transform_indices = @transform_1, window_bounds = array<i64: 1, 64, 1>}, {pipeline_mode = #tpu.pipeline_mode<synchronous>, transform_indices = @transform_2, window_bounds = array<i64: 64, 32>}, {pipeline_mode = #tpu.pipeline_mode<synchronous>, transform_indices = @transform_3, window_bounds = array<i64: 64, 1>}, {transform_indices = @transform_4, window_bounds = array<i64: 1, 64, 64>}]} {
    %c0 = arith.constant 0 : index
    %c0_0 = arith.constant 0 : index
    %c0_1 = arith.constant 0 : index
    %0 = vector.load %arg2[%c0, %c0_0, %c0_1] : memref<1x32x64xf32, #tpu.memory_space<vmem>>, vector<1x32x64xf32>
    %1 = vector.shape_cast %0 : vector<1x32x64xf32> to vector<32x64xf32>
    %c0_2 = arith.constant 0 : index
    %c0_3 = arith.constant 0 : index
    %2 = vector.load %arg4[%c0_2, %c0_3] : memref<64x32xf32, #tpu.memory_space<vmem>>, vector<64x32xf32>
    %cst = arith.constant dense<0.000000e+00> : vector<64x64xf32>
    %3 = tpu.matmul %2, %1, %cst {dimension_numbers = #tpu.dot_dimension_numbers<[1], [0], [0], [1], [0, 0, 1, 1], [], []>} : vector<64x32xf32>, vector<32x64xf32>, vector<64x64xf32> -> vector<64x64xf32>
    %c0_4 = arith.constant 0 : index
    %c0_5 = arith.constant 0 : index
    %4 = vector.load %arg5[%c0_4, %c0_5] : memref<64x1xf32, #tpu.memory_space<vmem>>, vector<64x1xf32>
    %5 = vector.broadcast %4 : vector<64x1xf32> to vector<64x64xf32>
    %6 = arith.addf %3, %5 : vector<64x64xf32>
    %7 = math.tanh %6 : vector<64x64xf32>
    %c0_6 = arith.constant 0 : index
    %c0_7 = arith.constant 0 : index
    %c0_8 = arith.constant 0 : index
    %8 = vector.load %arg3[%c0_6, %c0_7, %c0_8] : memref<1x64x1xf32, #tpu.memory_space<vmem>>, vector<1x64x1xf32>
    %9 = vector.shape_cast %8 : vector<1x64x1xf32> to vector<64x1xf32>
    %10 = vector.broadcast %9 : vector<64x1xf32> to vector<64x64xf32>
    %11 = arith.mulf %7, %10 : vector<64x64xf32>
    %c0_9 = arith.constant 0 : index
    %c0_10 = arith.constant 0 : index
    %c0_11 = arith.constant 0 : index
    %12 = vector.load %arg6[%c0_9, %c0_10, %c0_11] : memref<1x64x64xf32, #tpu.memory_space<vmem>>, vector<1x64x64xf32>
    %13 = vector.shape_cast %12 : vector<1x64x64xf32> to vector<64x64xf32>
    %14 = vector.shape_cast %11 : vector<64x64xf32> to vector<1x64x64xf32>
    tpu.vector_store %arg6[%c0_9, %c0_10, %c0_11], %14 {strides = array<i32>} : memref<1x64x64xf32, #tpu.memory_space<vmem>>, vector<1x64x64xf32>,
    return
  }
  func.func @transform_0(%arg0: i32, %arg1: i32) -> (i32, i32, i32) {
    %c0_i32 = arith.constant 0 : i32
    %c0_i32_0 = arith.constant 0 : i32
    return %arg0, %c0_i32, %arg1 : i32, i32, i32
  }
  func.func @transform_1(%arg0: i32, %arg1: i32) -> (i32, i32, i32) {
    %c0_i32 = arith.constant 0 : i32
    %c0_i32_0 = arith.constant 0 : i32
    %c0_i32_1 = arith.constant 0 : i32
    return %arg0, %c0_i32, %c0_i32_0 : i32, i32, i32
  }
  func.func @transform_2(%arg0: i32, %arg1: i32) -> (i32, i32) {
    %c0_i32 = arith.constant 0 : i32
    %c0_i32_0 = arith.constant 0 : i32
    %c0_i32_1 = arith.constant 0 : i32
    return %c0_i32, %c0_i32_0 : i32, i32
  }
  func.func @transform_3(%arg0: i32, %arg1: i32) -> (i32, i32) {
    %c0_i32 = arith.constant 0 : i32
    %c0_i32_0 = arith.constant 0 : i32
    %c0_i32_1 = arith.constant 0 : i32
    return %c0_i32, %c0_i32_0 : i32, i32
  }
  func.func @transform_4(%arg0: i32, %arg1: i32) -> (i32, i32, i32) {
    %c0_i32 = arith.constant 0 : i32
    %c0_i32_0 = arith.constant 0 : i32
    return %arg0, %c0_i32, %arg1 : i32, i32, i32
  }
}

</mosaic_0001>

<bundles_post_ra>
// kernel: tpu_custom_call.1
= control target key start
LH: loop header
LB: loop body
LE: loop exit
PB: predicated region body
PF: predicated region fallthrough
CT: control target
= control target key end

     0   :  { %9 = vsyncpa [#allocation3], 0  ;;  %s1054_s0 = inlined_call_operand.vmem [shape: f32[2,32,64], index: 0, kind: input, shape index: {}]   ;;  %s1055_s1 = inlined_call_operand.vmem [shape: f32[2,64,1], index: 1, kind: input, shape index: {}]   ;;  %s1056_s2 = inlined_call_operand.vmem [shape: f32[64,32], index: 2, kind: input, shape index: {}]   ;;  %s1057_s3 = inlined_call_operand.vmem [shape: f32[64,1], index: 3, kind: input, shape index: {}]   ;;  %s1058_s4 = inlined_call_operand.hbm [shape: f32[2,64,64], index: 4, kind: output, shape index: {}]  }
   0x1   :  { %11 = vsyncpa [#allocation3 + $0x1], 0  ;;  %s864_s15 = smov 0   ;;  %s866_s16 = smov 0  }
   0x2   :  { %s868_s17 = smov 0   ;;  %s870_s18 = smov 0  }
   0x3   :  { %s872_s19 = smov 0   ;;  %s874_s20 = smov 0  }
   0x4 LB: > { %s609_s21 = sadd.s32 4294967295, %s833_s20   ;;  %s610_s22 = sadd.s32 4294967294, %s833_s20   ;;  %s833_s20 = sphi %s874_s20, %s17_s20   ;;  %s829_s19 = sphi %s872_s19, %s1065_s19   ;;  %s825_s18 = sphi %s870_s18, %s1064_s18   ;;  %s821_s17 = sphi %s868_s17, %s1063_s17   ;;  %s817_s16 = sphi %s866_s16, %s1062_s16   ;;  %s813_s15 = sphi %s864_s15, %s1061_s15  }
   0x5   : > { %s29_s23 = sadd.s32 1, %s829_s19  ;;  %s134_s24 = sadd.s32 1, %s821_s17 }
   0x6   : > { %p31_p0 = scmp.ge.s32.totalorder %s29_s23, 2  ;;  %p144_p1 = scmp.ne.s32.totalorder %s821_s17, %s817_s16 }
   0x7   : > { %p145_p2 = scmp.eq.s32.totalorder %s609_s21, 1  ;;  %p150_p3 = scmp.ne.s32.totalorder %s817_s16, %s813_s15 }
   0x8   : > { %s1067_s23 = smov (%p31_p0, %s29_s23), 0  ;;  %p151_p5 = scmp.eq.s32.totalorder %s610_s22, 1 }
   0x9   : > { %p904_p4 = por %p145_p2, %p144_p1  ;;  %s129_s26 = ssub.s32 %s829_s19, %s1067_s23 }
   0xa   : > { %p613_p6 = scmp.ge.s32.totalorder %s833_s20, 1  ;;  %p132_p7 = scmp.eq.s32.totalorder %s129_s26, 0 }
   0xb   : > { %p911_p8 = por %p151_p5, %p150_p3  ;;  %p194_p9 = scmp.lt.s32.totalorder %s833_s20, 3 }
   0xc   : > { %s917_s28 = scalar_select %p132_p7, %s821_s17, %s134_s24  }
   0xd   : > { %p195_p10 = pnand %p613_p6, %p194_p9 }
   0xe   : > { %p228_p11 = scmp.lt.s32.totalorder (!%p195_p10), %s825_s18, 1  ;;  %v245_v0 = vld [vmem:[%s1056_s2] sm:$0xff] (!%p195_p10)  ;;  %vm301_vm0 = vcmask (!%p195_p10), 261120   ;;  %v835_v2 = vmov (!%p195_p10), 0   ;;  %v255_v3 = vld [vmem:[%s1057_s3 + $0x10] sm:$0xff] (!%p195_p10)  ;;  %v256_v5 = vld [vmem:[%s1057_s3 + $0x18] sm:$0xff] (!%p195_p10) }
   0xf   : > { %198 = sbr.rel (%p195_p10) target bundleno = 286 (0x11e), region = 36  ;;  %v249_v1 = vld [vmem:[%s1056_s2 + $0x20] sm:$0xff] (!%p195_p10)  ;;  %655 = vmatprep.mubr.msk.f32.mxu0 (!%p195_p10), %vm301_vm0, %v245_v0  ;;  %738 = vset.pattern.permute.xlu1 (!%p195_p10), %v835_v2  ;;  %v254_v6 = vld [vmem:[%s1057_s3 + $0x8] sm:$0xff] (!%p195_p10)  ;;  %v260_v15 = vld [vmem:[%s1057_s3 + $0x38] sm:$0xff] (!%p195_p10)  ;;  %s225_s13 = sand.u32 (!%p195_p10), 1, %s817_s16   ;;  %vm495_vm1 = vcmask (!%p195_p10), 523264  }
  0x10   : > { %661 = vmatprep.mubr.msk.f32.mxu1 (!%p195_p10), %vm301_vm0, %v249_v1  ;;  %737 = vset.pattern.permute.xlu0 (!%p195_p10), %v835_v2  ;;  %v253_v4 = vld [vmem:[%s1057_s3] sm:$0xff] (!%p195_p10)  ;;  %v258_v13 = vld [vmem:[%s1057_s3 + $0x28] sm:$0xff] (!%p195_p10)  ;;  %v259_v16 = vld [vmem:[%s1057_s3 + $0x30] sm:$0xff] (!%p195_p10)  ;;  %s614_s14 = sshll.u32 (!%p195_p10), %s225_s13, 6  ;;  %s1008_s29 = scalar_lea.sflag (!%p195_p10), [#allocation3], %s225_s13 }
  0x11   : > { %273 = vperm.xlu1 (!%p195_p10), %738, %v255_v3   ;;  %263 = vperm.xlu0 (!%p195_p10), %737, %v253_v4   ;;  %v257_v14 = vld [vmem:[%s1057_s3 + $0x20] sm:$0xff] (!%p195_p10)  ;;  %v246_v17 = vld [vmem:[%s1056_s2 + $0x8] sm:$0xff] (!%p195_p10)  ;;  %v247_v19 = vld [vmem:[%s1056_s2 + $0x10] sm:$0xff] (!%p195_p10)  ;;  %s227_s21 = scalar_lea.vmem (!%p195_p10), [#allocation2], %s614_s14  ;;  %s836_s5 = smov (!%p195_p10), [#allocation2]  }
  0x12   : > { %v250_v18 = vld [vmem:[%s1056_s2 + $0x28] sm:$0xff] (!%p195_p10)  ;;  %v251_v20 = vld [vmem:[%s1056_s2 + $0x30] sm:$0xff] (!%p195_p10)  ;;  %v248_v23 = vld [vmem:[%s1056_s2 + $0x18] sm:$0xff] (!%p195_p10)  ;;  %s759_s6 = sshll.u32 (!%p195_p10), %s836_s5, 4  ;;  %s760_s6 = int_to_ptr.vmem [resolvable:$false] %s759_s6 }
  0x13   : > { %v252_v24 = vld [vmem:[%s1056_s2 + $0x38] sm:$0xff] (!%p195_p10)  ;;  %s761_s8 = scalar_lea.vmem (!%p195_p10), %s760_s6, 2048 }
  0x15   : > { %278 = vperm.xlu1 (!%p195_p10), %738, %v256_v5   ;;  %268 = vperm.xlu0 (!%p195_p10), %737, %v254_v6  }
  0x16   : > { %s929_s7 = scalar_select %p228_p11, %s825_s18, 1 }
  0x18   : > { %s632_s12 = sshll.u32 %s929_s7, 5  ;;  %s633_s9 = sshll.u32 %s929_s7, 6 }
  0x19   : > { %s235_s24 = scalar_lea.vmem %s1054_s0, %s632_s12  ;;  %288 = vperm.xlu1 %738, %v258_v13   ;;  %283 = vperm.xlu0 %737, %v257_v14   ;;  %s240_s22 = scalar_lea.vmem %s1055_s1, %s633_s9 }
  0x1a   : > { %v241_v7 = vld [vmem:[%s235_s24] sm:$0xff]  ;;  %v242_v8 = vld [vmem:[%s235_s24 + $0x8] sm:$0xff]  ;;  %v243_v9 = vld [vmem:[%s235_s24 + $0x10] sm:$0xff] }
  0x1b   : > { %v667_v10 = vpack.c.bf16 %v242_v8, %v241_v7  ;;  %v244_v11 = vld [vmem:[%s235_s24 + $0x18] sm:$0xff]  ;;  %v440_v21 = vld [vmem:[%s240_s22 + $0x8] sm:$0xff]  ;;  %v439_v22 = vld [vmem:[%s240_s22] sm:$0xff]  ;;  %s519_s24 = sshll.u32 %s227_s21, 4  ;;  %s1001_s24 = int_to_ptr.vmem [resolvable:$true] %s519_s24 }
  0x1c   : > { %v671_v12 = vpack.c.bf16 %v244_v11, %v243_v9  ;;  %v442_v25 = vld [vmem:[%s240_s22 + $0x18] sm:$0xff]  ;;  %v441_v26 = vld [vmem:[%s240_s22 + $0x10] sm:$0xff]  ;;  %v444_v27 = vld [vmem:[%s240_s22 + $0x28] sm:$0xff]  ;;  %s755_s30 = scalar_lea.vmem %s1001_s24, 1024  ;;  %p762_p1 = scmp.lt.s32.totalorder %s1001_s24, %s760_s6 }
  0x1d   : > { %668 = vmatprep.subr.bf16.mxu0 %v667_v10  ;;  %675 = vmatprep.subr.bf16.mxu1 %v667_v10  ;;  %v443_v28 = vld [vmem:[%s240_s22 + $0x20] sm:$0xff]  ;;  %v446_v29 = vld [vmem:[%s240_s22 + $0x38] sm:$0xff]  ;;  %v445_v30 = vld [vmem:[%s240_s22 + $0x30] sm:$0xff]  ;;  %s634_s22 = sshll.u32 %s825_s18, 10  ;;  %p756_p12 = scmp.ne.s32.totalorder %s1001_s24, %s755_s30 }
  0x1e   : > { %670 = vmatpush3.bf16.msra.mxu0 %v667_v10  ;;  %677 = vmatpush3.bf16.msra.mxu1 %v667_v10  ;;  %s999_s18 = scalar_lea.hbm %s1058_s4, %s634_s22  ;;  %p763_p2 = scmp.lt.s32.totalorder %s761_s8, %s755_s30 }
  0x1f   : > { %672 = vmatprep.subr.bf16.mxu0 %v671_v12  ;;  %676 = vmatprep.subr.bf16.mxu1 %v671_v12  ;;  %p757_p13 = pnand %p756_p12, %p904_p4 }
  0x20   : > { %298 = vperm.xlu1 %738, %v260_v15   ;;  %293 = vperm.xlu0 %737, %v259_v16   ;;  %p764_p3 = por %p763_p2, %p762_p1 }
  0x21   : > { %p758_p0 = pneg %p757_p13 }
  0x22   : > { %674 = vmatpush3.bf16.msra.mxu0 %v671_v12  ;;  %678 = vmatpush3.bf16.msra.mxu1 %v671_v12 }
  0x23   : > { %p765_p5 = pnand %p764_p3, %p758_p0 }
  0x24   : > { %454 = vperm.xlu1 %738, %v440_v21   ;;  %449 = vperm.xlu0 %737, %v439_v22  }
  0x25   : > { %656 = vmatmul.mubr.msk.f32.vlgmr.msra.gmra.mrb[0].mxu0 %vm301_vm0, %v246_v17  ;;  %662 = vmatmul.mubr.msk.f32.vlgmr.msra.gmra.mrb[0].mxu1 %vm301_vm0, %v250_v18 }
  0x26   : > { %658 = vmatprep.mubr.msk.f32.mxu0 %vm301_vm0, %v247_v19  ;;  %664 = vmatprep.mubr.msk.f32.mxu1 %vm301_vm0, %v251_v20 }
  0x28   : > { %464 = vperm.xlu1 %738, %v442_v25   ;;  %459 = vperm.xlu0 %737, %v441_v26  }
  0x29   : > { %659 = vmatmul.mubr.msk.f32.gmra.mrb[2].mxu0 %vm301_vm0, %v248_v23  ;;  %665 = vmatmul.mubr.msk.f32.gmra.mrb[2].mxu1 %vm301_vm0, %v252_v24 }
  0x2c   : > { %474 = vperm.xlu1 %738, %v444_v27   ;;  %469 = vperm.xlu0 %737, %v443_v28  }
  0x30   : > { %484 = vperm.xlu1 %738, %v446_v29   ;;  %479 = vperm.xlu0 %737, %v445_v30  }
  0x90   : > { %v274_v31 = vpop.permute.xlu1 %273  ;;  %v264_v32 = vpop.permute.xlu0 %263 }
  0x94   : > { %v279_v33 = vpop.permute.xlu1 %278  ;;  %v269_v34 = vpop.permute.xlu0 %268 }
  0x98   : > { %v289_v35 = vpop.permute.xlu1 %288  ;;  %v284_v36 = vpop.permute.xlu0 %283 }
  0x9f   : > { %v299_v37 = vpop.permute.xlu1 %298  ;;  %v294_v38 = vpop.permute.xlu0 %293 }
  0xa3   : > { %v455_v39 = vpop.permute.xlu1 %454  ;;  %v450_v46 = vpop.permute.xlu0 %449 }
  0xa7   : > { %v465_v55 = vpop.permute.xlu1 %464  ;;  %v460_v58 = vpop.permute.xlu0 %459 }
  0xab   : > { %v475_v59 = vpop.permute.xlu1 %474  ;;  %v470_v62 = vpop.permute.xlu0 %469 }
  0xaf   : > { %v485_v7 = vpop.permute.xlu1 %484  ;;  %v480_v12 = vpop.permute.xlu0 %479 }
  0xf8   : > { %v657_v40 = vpop.f32.mrb[0].mxu0  ;;  %v663_v41 = vpop.f32.mrb[0].mxu1 }
  0xf9   : > { %v398_v42 = vadd.f32 %v657_v40, %v269_v34  ;;  %v418_v43 = vadd.f32 %v663_v41, %v289_v35  ;;  %v392_v44 = vpop.f32.mrb[1].mxu0  ;;  %v412_v45 = vpop.f32.mrb[1].mxu1 }
  0xfa   : > { %v393_v47 = vadd.f32 %v392_v44, %v264_v32  ;;  %v413_v48 = vadd.f32 %v412_v45, %v284_v36 }
  0xfb   : > { %739 = vtanh.f32 %v398_v42 }
  0xfc   : > { %741 = vtanh.f32 %v418_v43  ;;  %v660_v49 = vpop.f32.mrb[2].mxu0  ;;  %v666_v50 = vpop.f32.mrb[2].mxu1 }
  0xfd   : > { %743 = vtanh.f32 %v393_v47  ;;  %v408_v51 = vadd.f32 %v660_v49, %v279_v33  ;;  %v428_v52 = vadd.f32 %v666_v50, %v299_v37  ;;  %v402_v53 = vpop.f32.mrb[3].mxu0  ;;  %v422_v54 = vpop.f32.mrb[3].mxu1 }
  0xfe   : > { %745 = vtanh.f32 %v413_v48  ;;  %v403_v56 = vadd.f32 %v402_v53, %v274_v31  ;;  %v423_v57 = vadd.f32 %v422_v54, %v294_v38 }
  0xff   : > { %747 = vtanh.f32 %v408_v51 }
 0x100   : > { %749 = vtanh.f32 %v428_v52 }
 0x101   : > { %751 = vtanh.f32 %v403_v56 }
 0x102   : > { %753 = vtanh.f32 %v423_v57 }
 0x105   : > { %v740_v60 = vpop.eup %739 }
 0x106   : > { %v742_v61 = vpop.eup %741  ;;  %v488_v63 = vmul.f32 %v740_v60, %v455_v39 }
 0x107   : > { %v744_v0 = vpop.eup %743  ;;  %v492_v1 = vmul.f32 %v742_v61, %v475_v59 }
 0x108   : > { %v746_v2 = vpop.eup %745  ;;  %497 = vst.msk [vmem:[%s227_s21 + $0x8] sm:$0xff] %vm495_vm1, %v488_v63  ;;  %v487_v3 = vmul.f32 %v744_v0, %v450_v46 }
 0x109   : > { %v748_v4 = vpop.eup %747  ;;  %501 = vst.msk [vmem:[%s227_s21 + $0x28] sm:$0xff] %vm495_vm1, %v492_v1  ;;  %v491_v5 = vmul.f32 %v746_v2, %v470_v62 }
 0x10a   : > { %v750_v6 = vpop.eup %749  ;;  %496 = vst.msk [vmem:[%s227_s21] sm:$0xff] %vm495_vm1, %v487_v3  ;;  %v490_v8 = vmul.f32 %v748_v4, %v465_v55 }
 0x10b   : > { %v752_v9 = vpop.eup %751  ;;  %500 = vst.msk [vmem:[%s227_s21 + $0x20] sm:$0xff] %vm495_vm1, %v491_v5  ;;  %v494_v10 = vmul.f32 %v750_v6, %v485_v7 }
 0x10c   : > { %v754_v11 = vpop.eup %753  ;;  %499 = vst.msk [vmem:[%s227_s21 + $0x18] sm:$0xff] %vm495_vm1, %v490_v8  ;;  %v489_v13 = vmul.f32 %v752_v9, %v460_v58 }
 0x10d   : > { %503 = vst.msk [vmem:[%s227_s21 + $0x38] sm:$0xff] %vm495_vm1, %v494_v10  ;;  %v493_v14 = vmul.f32 %v754_v11, %v480_v12 }
 0x10e   : > { %498 = vst.msk [vmem:[%s227_s21 + $0x10] sm:$0xff] %vm495_vm1, %v489_v13 }
 0x10f   : > { %502 = vst.msk [vmem:[%s227_s21 + $0x30] sm:$0xff] %vm495_vm1, %v493_v14 }
 0x110   : > { %768 = shalt.err (!%p765_p5)
}
 0x111   : > { %s769_s9 = scalar_lea.hbm %s999_s18, 1024  ;;  %s773_s12 = scalar_lea.hbm %s1058_s4, 2048 }
 0x112   : > { %p770_p6 = scmp.ne.s32.totalorder %s999_s18, %s769_s9  ;;  %p774_p10 = scmp.lt.u32.totalorder %s999_s18, %s1058_s4 }
 0x113   : > { %p775_p11 = scmp.lt.u32.totalorder %s773_s12, %s769_s9  ;;  %p777_p13 = scmp.lt.u32.totalorder %s769_s9, %s999_s18 }
 0x114   : > { %p771_p7 = pnand %p770_p6, %p904_p4 }
 0x115   : > { %p776_p12 = por %p775_p11, %p774_p10 }
 0x116   : > { %p772_p9 = pneg %p771_p7 }
 0x117   : > { %p778_p0 = por %p777_p13, %p776_p12 }
 0x119   : > { %p779_p1 = pnand %p778_p0, %p772_p9 }
 0x11b   : > { %782 = shalt.err (!%p779_p1)
}
 0x11c   : > { %s837_s21 = smov 128   ;;  %s838_s22 = smov 8  }
 0x11d   : > { %679 = dma.vmem_to_hbm [thread:$0]  (%p904_p4), %s1001_s24, 1024, %s999_s18, %s1008_s29, %s837_s21, %s837_s21, %s838_s22  }
 0x11e PF: > { %p685_p2 = scmp.ge.s32.totalorder %s833_s20, 2  ;;  %s534_s7 = sand.u32 1, %s813_s15  }
 0x11f   : > { %s535_s26 = scalar_lea.sflag [#allocation3], %s534_s7 }
 0x120   : > { %p682_p3 = pnand %p685_p2, %p911_p8 }
 0x122   : > { %808 = dma.done.wait (!%p682_p3), %s535_s26, 1024  }
 0x123   : > { %810 = vsyncadd (!%p682_p3), %s535_s26, 4294966272  ;;  %s17_s20 = sadd.s32 1, %s833_s20   ;;  %s1061_s15 = smov %s817_s16 }
 0x124   : > { %p14_p5 = scmp.ge.s32.totalorder %s17_s20, 4   ;;  %s1062_s16 = smov %s821_s17 }
 0x125   : > { %s1063_s17 = smov %s917_s28  ;;  %s1064_s18 = smov %s829_s19 }
 0x126   : > { %s1065_s19 = smov %s1067_s23  ;;  %16 = sbr.rel (!%p14_p5) target bundleno = 4 (0x4), region = 74 }
 0x12d   :  { %540 = vsyncpa [#allocation3], 1 }
 0x12e   :  { %542 = vsyncpa [#allocation3 + $0x1], 1 }

</bundles_post_ra>
